<compile_context>
chip_gen: v5e
topology: v5e:2x2
jax: 0.10.0
libtpu: 0.0.40
codegen_flags: <defaults>
</compile_context>

<pallas_src>
import jax
import jax.numpy as jnp
from jax.experimental import pallas as pl
from jax.experimental.pallas import tpu as pltpu


_LANE = 128
_MIN_GRID_STEPS = 4                     # pipelining + 2-way TC split on v7x
_VMEM_BLOCK_BUDGET = 12 * 1024 * 1024   # in/out x double-buffered resident blocks
_VMEM_LIMIT_BYTES = 32 * 1024 * 1024    # safe on v5e/v6e (128 MiB) and v7x (64 MiB)


def _channel_shuffle_kernel(x_ref, o_ref):
    # x_ref: (1, groups, cpg, hw_tile)  ->  o_ref: (1, cpg, groups, hw_tile)
    # Lane axis untouched; the shuffle is a sublane-row transpose of the tile.
    o_ref[...] = jnp.swapaxes(x_ref[...], 1, 2)


def _pick_hw_tile(hw, n, c, itemsize, budget):
    """Lane-dense spatial tile: full HW when it fits, else a 128-multiple."""
    # 2 operands (in/out) x 2 pipeline buffers each = 4 resident (C, tile) blocks.
    max_tile = max(_LANE, budget // (4 * c * itemsize))
    if hw % _LANE != 0:
        # Ragged lane dim: only a full-extent block is legal.
        # TODO(synk): pad HW up to a lane multiple if this ever exceeds VMEM.
        return hw
    # Lane-multiple tile sizes that divide HW exactly (no ragged edge block).
    divisors = [t for t in range(_LANE, hw + 1, _LANE) if hw % t == 0]
    fitting = [t for t in divisors if t <= max_tile] or [_LANE]
    # Largest fitting tile (full HW when possible -> single contiguous burst)...
    best = fitting[-1]
    # ...unless that leaves too few grid steps to pipeline / split across TCs.
    if n * (hw // best) < _MIN_GRID_STEPS:
        for t in reversed(fitting):
            if n * (hw // t) >= _MIN_GRID_STEPS:
                best = t
                break
        else:
            best = fitting[0]
    return best


def channel_shuffle(x, groups, *, hw_tile=None):
    """x: (N, C, H, W). Returns the channel-shuffled array, same shape/dtype."""
    N, C, H, W = x.shape
    assert C % groups == 0, "C must be divisible by groups"
    cpg = C // groups

    # Identity permutation: skip the HBM round trip entirely.
    if groups == 1 or cpg == 1:
        return x

    HW = H * W
    x_flat = x.reshape(N, C, HW)

    # Pack sub-32-bit dtypes into 32-bit lane words (the permute only moves
    # whole channel rows, so lane content interpretation is irrelevant).
    itemsize = x.dtype.itemsize
    packed = itemsize < 4 and (HW * itemsize) % 4 == 0
    if packed:
        ratio = 4 // itemsize
        x_words = jax.lax.bitcast_convert_type(
            x_flat.reshape(N, C, HW // ratio, ratio), jnp.uint32
        )
    else:
        # TODO(synk): sub-32-bit dtypes with ragged HW*itemsize stay unpacked.
        x_words = x_flat
    HWw = x_words.shape[-1]
    word_size = x_words.dtype.itemsize

    if hw_tile is None:
        hw_tile = _pick_hw_tile(HWw, N, C, word_size, _VMEM_BLOCK_BUDGET)
    else:
        assert hw_tile == HWw or (0 < hw_tile <= HWw and hw_tile % _LANE == 0), (
            "hw_tile must equal the (packed) spatial extent or be a multiple of 128"
        )
    num_hw_tiles = pl.cdiv(HWw, hw_tile)

    x_view = x_words.reshape(N, groups, cpg, HWw)

    out_view = pl.pallas_call(
        _channel_shuffle_kernel,
        out_shape=jax.ShapeDtypeStruct((N, cpg, groups, HWw), x_words.dtype),
        grid=(N, num_hw_tiles),
        in_specs=[
            pl.BlockSpec((1, groups, cpg, hw_tile), lambda n, s: (n, 0, 0, s))
        ],
        out_specs=pl.BlockSpec(
            (1, cpg, groups, hw_tile), lambda n, s: (n, 0, 0, s)
        ),
        compiler_params=pltpu.CompilerParams(
            dimension_semantics=("parallel", "parallel"),
            vmem_limit_bytes=_VMEM_LIMIT_BYTES,
        ),
        cost_estimate=pl.CostEstimate(
            flops=0,
            transcendentals=0,
            bytes_accessed=2 * N * C * HW * itemsize,
        ),
    )(x_view)

    out_words = out_view.reshape(N, C, HWw)
    if packed:
        out_flat = jax.lax.bitcast_convert_type(out_words, x.dtype).reshape(
            N, C, HW
        )
    else:
        out_flat = out_words
    return out_flat.reshape(N, C, H, W)


def channel_shuffle_ref(x, groups):
    N, C, H, W = x.shape
    cpg = C // groups
    return (
        x.reshape(N, groups, cpg, H, W)
        .transpose(0, 2, 1, 3, 4)
        .reshape(N, C, H, W)
    )


if __name__ == "__main__":
    key = jax.random.PRNGKey(0)
    N, C, H, W = 2, 4, 16, 16
    groups = 2

    x = jax.random.normal(key, (N, C, H, W), dtype=jnp.float32)
    ref = channel_shuffle_ref(x, groups)

    # Default tile choice (splits HW=256 into 2x128 tiles -> 4 grid steps).
    out = jax.block_until_ready(channel_shuffle(x, groups))
    assert out.shape == ref.shape and out.dtype == ref.dtype
    assert jnp.array_equal(out, ref), "mismatch vs reference channel shuffle"

    # Forced full-HW single-burst tile (hw_tile == HW).
    out_full = jax.block_until_ready(channel_shuffle(x, groups, hw_tile=H * W))
    assert jnp.array_equal(out_full, ref), "mismatch (full-HW tile path)"

    # Packed sub-32-bit path (bf16 lanes bitcast to uint32 words).
    x_bf16 = x.astype(jnp.bfloat16)
    ref_bf16 = channel_shuffle_ref(x_bf16, groups)
    out_bf16 = jax.block_until_ready(channel_shuffle(x_bf16, groups))
    assert out_bf16.dtype == x_bf16.dtype
    assert jnp.array_equal(out_bf16, ref_bf16), "mismatch (packed bf16 path)"

    # Degenerate shuffle is an identity and skips the kernel entirely.
    assert jnp.array_equal(channel_shuffle(x, 1), x)

    print("KERNEL_OK")
</pallas_src>

<mosaic_0001>
module attributes {stable_mosaic.version = 11 : i64} {
  func.func @_channel_shuffle_kernel(%arg0: i32, %arg1: i32, %arg2: memref<1x2x2x128xf32, #tpu.memory_space<vmem>>, %arg3: memref<1x2x2x128xf32, #tpu.memory_space<vmem>>) attributes {dimension_semantics = [#tpu.dimension_semantics<parallel>, #tpu.dimension_semantics<parallel>], iteration_bounds = array<i64: 2, 2>, scalar_prefetch = 0 : i64, scratch_operands = 0 : i64, tpu.core_type = #tpu.core_type<tc>, window_params = [{transform_indices = @transform_0, window_bounds = array<i64: 1, 2, 2, 128>}, {transform_indices = @transform_1, window_bounds = array<i64: 1, 2, 2, 128>}]} {
    %c0 = arith.constant 0 : index
    %c0_0 = arith.constant 0 : index
    %c0_1 = arith.constant 0 : index
    %c0_2 = arith.constant 0 : index
    %0 = vector.load %arg2[%c0, %c0_0, %c0_1, %c0_2] : memref<1x2x2x128xf32, #tpu.memory_space<vmem>>, vector<1x2x2x128xf32>
    %1 = tpu.transpose %0, [0, 2, 1, 3] : vector<1x2x2x128xf32> -> vector<1x2x2x128xf32>
    %c0_3 = arith.constant 0 : index
    %c0_4 = arith.constant 0 : index
    %c0_5 = arith.constant 0 : index
    %c0_6 = arith.constant 0 : index
    %2 = vector.load %arg3[%c0_3, %c0_4, %c0_5, %c0_6] : memref<1x2x2x128xf32, #tpu.memory_space<vmem>>, vector<1x2x2x128xf32>
    tpu.vector_store %arg3[%c0_3, %c0_4, %c0_5, %c0_6], %1 {strides = array<i32>} : memref<1x2x2x128xf32, #tpu.memory_space<vmem>>, vector<1x2x2x128xf32>,
    return
  }
  func.func @transform_0(%arg0: i32, %arg1: i32) -> (i32, i32, i32, i32) {
    %c0_i32 = arith.constant 0 : i32
    %c0_i32_0 = arith.constant 0 : i32
    %c0_i32_1 = arith.constant 0 : i32
    return %arg0, %c0_i32, %c0_i32_0, %arg1 : i32, i32, i32, i32
  }
  func.func @transform_1(%arg0: i32, %arg1: i32) -> (i32, i32, i32, i32) {
    %c0_i32 = arith.constant 0 : i32
    %c0_i32_0 = arith.constant 0 : i32
    %c0_i32_1 = arith.constant 0 : i32
    return %arg0, %c0_i32, %c0_i32_0, %arg1 : i32, i32, i32, i32
  }
}

</mosaic_0001>

<bundles_post_ra>
// kernel: tpu_custom_call.1
= control target key start
LH: loop header
LB: loop body
LE: loop exit
PB: predicated region body
PF: predicated region fallthrough
CT: control target
= control target key end

     0   :  { %6 = vsyncpa [#allocation3], 0  ;;  %s662_s0 = inlined_call_operand.hbm [shape: f32[2,2,2,256], index: 0, kind: input, shape index: {}]   ;;  %s663_s1 = inlined_call_operand.hbm [shape: f32[2,2,2,256], index: 1, kind: output, shape index: {}]  }
   0x1   :  { %8 = vsyncpa [#allocation3 + $0x1], 0 }
   0x2   :  { %9 = vsyncpa [#allocation4], 0 }
   0x3   :  { %11 = vsyncpa [#allocation4 + $0x1], 0  ;;  %s520_s6 = smov 0   ;;  %s522_s7 = smov 0  }
   0x4   :  { %s524_s8 = smov 0   ;;  %s526_s9 = smov 0  }
   0x5   :  { %s528_s10 = smov 0   ;;  %s530_s11 = smov 0  }
   0x6   :  { %s532_s12 = smov 0   ;;  %s534_s13 = smov 0  }
   0x7 LB: > { %s272_s14 = sadd.s32 4294967295, %s501_s13   ;;  %s273_s15 = sadd.s32 4294967294, %s501_s13   ;;  %s501_s13 = sphi %s534_s13, %s17_s13   ;;  %s497_s12 = sphi %s532_s12, %s677_s12   ;;  %s493_s11 = sphi %s530_s11, %s676_s11   ;;  %s489_s10 = sphi %s528_s10, %s675_s10   ;;  %s485_s9 = sphi %s526_s9, %s674_s9   ;;  %s481_s8 = sphi %s524_s8, %s673_s8   ;;  %s477_s7 = sphi %s522_s7, %s672_s7   ;;  %s473_s6 = sphi %s520_s6, %s671_s6  }
   0x8   : > { %s26_s16 = sadd.s32 1, %s493_s11  ;;  %s29_s17 = sadd.s32 1, %s497_s12 }
   0x9   : > { %p27_p0 = scmp.ge.s32.totalorder %s26_s16, 2  ;;  %s38_s18 = sadd.s32 1, %s481_s8 }
   0xa   : > { %p45_p1 = scmp.ne.s32.totalorder %s481_s8, %s477_s7  ;;  %p46_p2 = scmp.eq.s32.totalorder %s501_s13, 0 }
   0xb   : > { %s679_s16 = smov (%p27_p0, %s26_s16), 0  ;;  %s681_s17 = smov (!%p27_p0, %s29_s17), %s497_s12 }
   0xc   : > { %s34_s19 = ssub.s32 %s493_s11, %s679_s16  ;;  %p573_p3 = por %p46_p2, %p45_p1 }
   0xd   : > { %p31_p4 = scmp.ge.s32.totalorder %s681_s17, 2  ;;  %p51_p5 = scmp.ne.s32.totalorder %s477_s7, %s473_s6 }
   0xe   : > { %p52_p6 = scmp.eq.s32.totalorder %s272_s14, 0  ;;  %p77_p7 = scmp.eq.s32.totalorder %s272_s14, 3 }
   0xf   : > { %s683_s17 = smov (%p31_p4, %s681_s17), 0  ;;  %p83_p10 = scmp.eq.s32.totalorder %s273_s15, 3 }
  0x10   : > { %666 = sst [smem:[#allocation8_spill]] %s683_s17  ;;  %p581_p8 = por %p52_p6, %p51_p5 }
  0x11   : > { %p585_p9 = por %p77_p7, %p45_p1  ;;  %s33_s23 = ssub.s32 %s497_s12, %s683_s17 }
  0x12   : > { %s35_s24 = sor.u32 %s34_s19, %s33_s23  ;;  %p591_p12 = por %p83_p10, %p51_p5 }
  0x13   : > { %p36_p11 = scmp.eq.s32.totalorder %s35_s24, 0  ;;  %p300_p13 = scmp.lt.s32.totalorder %s501_s13, 4 }
  0x14   : > { %s103_s26 = sand.u32 1, %s481_s8   ;;  %s277_s29 = sshll.u32 %s497_s12, 2 }
  0x15   : > { %s598_s27 = scalar_select %p36_p11, %s481_s8, %s38_s18  }
  0x16   : > { %s276_s28 = sshll.u32 %s103_s26, 2  ;;  %s111_s30 = sadd.s32 %s493_s11, %s277_s29 }
  0x17   : > { %s107_s2 = scalar_lea.vmem [#allocation2], %s276_s28  ;;  %s278_s4 = sshll.u32 %s111_s30, 1 }
  0x18   : > { %s116_s3 = sshll.u32 %s107_s2, 4  ;;  %s113_s15 = scalar_lea.hbm %s662_s0, %s278_s4  ;;  %s117_s3 = int_to_ptr.vmem [resolvable:$true] %s116_s3 }
  0x19   : > { %p293_p0 = pnand %p300_p13, %p573_p3  ;;  %s114_s19 = sshll.u32 %s113_s15, 4  ;;  %s115_s19 = int_to_ptr.hbm [resolvable:$true] %s114_s19 }
  0x1a   : > { %s104_s23 = scalar_lea.sflag [#allocation3], %s103_s26  ;;  %s503_s18 = smov 64  }
  0x1b   : > { %s504_s24 = smov 32   ;;  %s505_s17 = smov 2  }
  0x1c   : > { %295 = dma.hbm_to_vmem [thread:$0]  (!%p293_p0), %s115_s19, 64, %s117_s3, %s104_s23, %s503_s18, %s504_s24, %s505_s17  }
  0x1d   : > { %p279_p1 = scmp.ge.s32.totalorder %s501_s13, 1  ;;  %p124_p2 = scmp.lt.s32.totalorder %s501_s13, 5 }
  0x1f   : > { %p125_p4 = pnand %p279_p1, %p124_p2 }
  0x20   : > { %s610_s28 = sand.u32 (!%p125_p4), 1, %s477_s7  }
  0x21   : > { %128 = sbr.rel (%p125_p4) target bundleno = 58 (0x3a), region = 24  ;;  %s280_s29 = sshll.u32 (!%p125_p4), %s610_s28, 2 }
  0x22   : > { %s131_s20 = scalar_lea.sflag (!%p125_p4), [#allocation3], %s610_s28  ;;  %s134_s30 = scalar_lea.vmem (!%p125_p4), [#allocation2], %s280_s29 }
  0x26   : > { %464 = dma.done.wait (%p581_p8), %s131_s20, 64  }
  0x27   : > { %466 = vsyncadd (%p581_p8), %s131_s20, 4294967232  ;;  %s284_s17 = sshll.u32 %s489_s10, 2  ;;  %v506_v0 = vmov 1934713408   ;;  %v154_v2 = vld [vmem:[%s134_s30] sm:$0x3] }
  0x28   : > { %s178_s26 = sadd.s32 %s485_s9, %s284_s17  ;;  %v160_v1 = vunpack.c.l.s4 %v506_v0  ;;  %v155_v3 = vld [vmem:[%s134_s30 + $0x2] sm:$0x3]  ;;  %vm157_vm0 = vcmask 1047556   ;;  %s153_s14 = scalar_lea.vmem [#allocation5], %s280_s29 }
  0x29   : > { %s285_s2 = sshll.u32 %s178_s26, 1  ;;  %v156_v5 = vrot.slane %v155_v3, 4  ;;  %s181_s21 = sshll.u32 %s153_s14, 4  ;;  %s182_s21 = int_to_ptr.vmem [resolvable:$true] %s181_s21 }
  0x2a   : > { %v161_v4 = vunpack.c.0.s8 %v160_v1  ;;  %s180_s5 = scalar_lea.hbm %s663_s1, %s285_s2  ;;  %s168_s10 = scalar_lea.sflag [#allocation4], %s610_s28 }
  0x2b   : > { %v158_v6 = vsel %vm157_vm0, %v156_v5, %v154_v2  ;;  %s183_s9 = sshll.u32 %s180_s5, 4  ;;  %s423_s24 = scalar_lea.hbm %s663_s1, 16  ;;  %s184_s9 = int_to_ptr.hbm [resolvable:$true] %s183_s9 }
  0x2c   : > { %v162_v7 = vperm.slane %v158_v6, %v161_v4  ;;  %282 = vst.sshfl [vmem:[%s153_s14] sm:$0x11 pattern:$0x73516240] %v158_v6  ;;  %s417_s15 = sshra.s32 %s184_s9, 4  ;;  %s418_s15 = int_to_ptr.hbm [resolvable:$true] %s417_s15 }
  0x2d   : > { %s419_s19 = scalar_lea.hbm %s418_s15, 4  ;;  %p424_p7 = scmp.lt.s32.totalorder %s418_s15, %s663_s1 }
  0x2e   : > { %v163_v8 = vrot.slane %v162_v7, 4  ;;  %p420_p3 = scmp.ne.s32.totalorder %s418_s15, %s419_s19  ;;  %p425_p8 = scmp.lt.s32.totalorder %s423_s24, %s419_s19 }
  0x30   : > { %v164_v9 = vsel %vm157_vm0, 0.0, %v163_v8  ;;  %p421_p5 = pnand %p420_p3, %p585_p9  ;;  %p426_p10 = por %p425_p8, %p424_p7 }
  0x31   : > { %166 = vst [vmem:[%s153_s14 + $0x2] sm:$0x3] %v164_v9 }
  0x32   : > { %p422_p6 = pneg %p421_p5 }
  0x34   : > { %p427_p11 = pnand %p426_p10, %p422_p6 }
  0x36   : > { %430 = shalt.err (!%p427_p11)
}
  0x37   : > { %s507_s28 = smov 32   ;;  %s508_s30 = smov 64  }
  0x38   : > { %s509_s17 = smov 2  }
  0x39   : > { %290 = dma.vmem_to_hbm [thread:$0]  (%p585_p9), %s182_s21, 64, %s184_s9, %s168_s10, %s507_s28, %s508_s30, %s509_s17  }
  0x3a PF: > { %p301_p13 = scmp.ge.s32.totalorder %s501_s13, 2  ;;  %s198_s26 = sand.u32 1, %s473_s6  }
  0x3b   : > { %s199_s2 = scalar_lea.sflag [#allocation4], %s198_s26 }
  0x3c   : > { %p297_p0 = pnand %p301_p13, %p591_p12 }
  0x3e   : > { %p298_p1 = pneg %p297_p0 }
  0x40   : > { %468 = dma.done.wait (%p298_p1), %s199_s2, 64  }
  0x41   : > { %470 = vsyncadd (%p298_p1), %s199_s2, 4294967232  ;;  %s17_s13 = sadd.s32 1, %s501_s13   ;;  %s670_s22 = sld [smem:[#allocation8_spill]] }
  0x42   : > { %p14_p2 = scmp.ge.s32.totalorder %s17_s13, 6   ;;  %s671_s6 = smov %s477_s7 }
  0x43   : > { %s672_s7 = smov %s481_s8  ;;  %s673_s8 = smov %s598_s27 }
  0x44   : > { %s674_s9 = smov %s493_s11  ;;  %s675_s10 = smov %s497_s12 }
  0x45   : > { %s676_s11 = smov %s679_s16  ;;  %16 = sbr.rel (!%p14_p2) target bundleno = 7 (0x7), region = 69 }
  0x47   : > { %s677_s12 = smov %s670_s22 }
  0x4a   :  { %205 = vsyncpa [#allocation3], 1 }
  0x4b   :  { %207 = vsyncpa [#allocation3 + $0x1], 1 }
  0x4c   :  { %208 = vsyncpa [#allocation4], 1 }
  0x4d   :  { %210 = vsyncpa [#allocation4 + $0x1], 1 }

</bundles_post_ra>
